<compile_context>
chip_gen: v7x
topology: tpu7x:2x2x1
jax: 0.10.0
libtpu: 0.0.40
codegen_flags: <defaults>
</compile_context>

<pallas_src>
import functools

import jax
import jax.numpy as jnp
from jax.experimental import pallas as pl
from jax.experimental.pallas import tpu as pltpu


def _round_up(n, m):
    return ((n + m - 1) // m) * m


def _vmem_budget_bytes():
    """~75% of physical VMEM (96 MiB v5e/v6e, 48 MiB v7x); fallback 48 MiB."""
    cap = 64 << 20
    try:
        info = pltpu.get_tpu_info()
        cap = int(getattr(info, "vmem_capacity_bytes", cap))
    except Exception:
        pass
    return (cap * 3) // 4


def _sublane_rows(dtype):
    return {4: 8, 2: 16, 1: 32}.get(jnp.dtype(dtype).itemsize, 8)


def _ffn_kernel(x_ref, w1_ref, b1_ref, w2_ref, b2_ref, o_ref, acc_ref):
    # Grid: (row_tiles, h_tiles). Per step:
    #   x_ref:  (tm, E)    row-tile of tokens (same block across the h axis -> no re-DMA)
    #   w1_ref: (E, th)    H-chunk of the first linear weight
    #   b1_ref: (1, th)
    #   w2_ref: (th, E)    H-chunk of the second linear weight
    #   b2_ref: (1, E)
    #   acc_ref:(tm, E)    f32 accumulator, resident across the h axis
    h_idx = pl.program_id(1)

    @pl.when(h_idx == 0)
    def _():
        acc_ref[...] = jnp.zeros_like(acc_ref)

    x = x_ref[...]  # native dtype straight to the MXU (no f32 upcast)
    h = jnp.dot(x, w1_ref[...], preferred_element_type=jnp.float32)
    h = jnp.maximum(h + b1_ref[...].astype(jnp.float32), 0.0)  # ReLU on f32 partials

    acc_ref[...] += jnp.dot(h.astype(w2_ref.dtype), w2_ref[...],
                            preferred_element_type=jnp.float32)

    @pl.when(h_idx == pl.num_programs(1) - 1)
    def _():
        y = acc_ref[...] + b2_ref[...].astype(jnp.float32)
        o_ref[...] = y.astype(o_ref.dtype)


def prepare_params(w1, b1, w2, b2, *, tm=None, vmem_budget=None):
    """Pad weights once (outside the per-call path) and pick VMEM-aware tile sizes.

    w1: (E, 4E), b1: (4E,), w2: (4E, E), b2: (E,)  -- already (in, out) layout.
    Returns (padded_params, cfg) where cfg holds the static tiling config.
    """
    E, H = w1.shape
    assert w2.shape == (H, E) and b1.shape == (H,) and b2.shape == (E,)

    budget = int(vmem_budget) if vmem_budget is not None else _vmem_budget_bytes()
    w_itemsize = jnp.dtype(w1.dtype).itemsize

    E_pad = _round_up(E, 128)
    H_pad128 = _round_up(H, 128)

    # Row tile: big VMEM (v5e/v6e) -> 512, small VMEM (v7x) -> 256.
    if tm is None:
        tm = 512 if budget >= (80 << 20) else 256
    tm = int(tm)

    # Per-kernel fixed footprint: double-buffered x & out tiles, f32 acc, biases.
    fixed = (2 * tm * E_pad * w_itemsize          # x tile, double-buffered
             + 2 * tm * E_pad * w_itemsize        # out tile, double-buffered
             + tm * E_pad * 4                     # f32 accumulator scratch
             + 2 * (H_pad128 + E_pad) * w_itemsize * 2)  # b1/b2, double-buffered
    avail = max(budget - fixed, 0)
    per_th = 2 * 2 * E_pad * w_itemsize           # W1 col-chunk + W2 row-chunk, 2x buffered
    th_max = avail // per_th

    # Prefer weight-resident (th == H_pad128); otherwise largest friendly 128-multiple.
    th = 128
    for cand in (H_pad128, 4096, 2048, 1024, 512, 256, 128):
        if cand <= H_pad128 and cand <= th_max:
            th = cand
            break
    H_pad = _round_up(H, th)

    w1p = jnp.pad(w1, ((0, E_pad - E), (0, H_pad - H)))
    b1p = jnp.pad(b1.reshape(1, H), ((0, 0), (0, H_pad - H)))
    w2p = jnp.pad(w2, ((0, H_pad - H), (0, E_pad - E)))
    b2p = jnp.pad(b2.reshape(1, E), ((0, 0), (0, E_pad - E)))

    cfg = dict(E=int(E), H=int(H), E_pad=int(E_pad), H_pad=int(H_pad),
               th=int(th), tm=tm, vmem_limit=budget)
    return (w1p, b1p, w2p, b2p), cfg


@functools.partial(
    jax.jit,
    static_argnames=("E", "H", "E_pad", "H_pad", "th", "tm", "vmem_limit"))
def _ffn_forward(x, w1p, b1p, w2p, b2p, *, E, H, E_pad, H_pad, th, tm, vmem_limit):
    B, T, E_in = x.shape
    assert E_in == E
    M = B * T

    x_itemsize = jnp.dtype(x.dtype).itemsize
    sublane = _sublane_rows(x.dtype)
    tm_eff = min(tm, _round_up(M, sublane))   # dtype sublane tile, never bigger than needed
    M_pad = _round_up(M, tm_eff)

    x2d = x.reshape(M, E)
    if M_pad != M or E_pad != E:
        x2d = jnp.pad(x2d, ((0, M_pad - M), (0, E_pad - E)))

    n_row_tiles = M_pad // tm_eff
    n_h_tiles = H_pad // th
    grid = (n_row_tiles, n_h_tiles)

    w_itemsize = jnp.dtype(w1p.dtype).itemsize
    # Weights are re-streamed once per row tile only when the h axis is chunked; with a
    # single h block the block index never changes, so they stay VMEM-resident (1 pass).
    weight_passes = n_row_tiles if n_h_tiles > 1 else 1
    cost = pl.CostEstimate(
        flops=4 * M * E * H,
        transcendentals=0,
        bytes_accessed=(x2d.size + M_pad * E_pad) * x_itemsize
        + weight_passes * (w1p.size + w2p.size) * w_itemsize
        + (b1p.size + b2p.size) * w_itemsize,
    )

    out2d = pl.pallas_call(
        _ffn_kernel,
        out_shape=jax.ShapeDtypeStruct((M_pad, E_pad), x.dtype),
        grid_spec=pltpu.PrefetchScalarGridSpec(
            num_scalar_prefetch=0,
            grid=grid,
            in_specs=[
                pl.BlockSpec((tm_eff, E_pad), lambda i, h: (i, 0)),   # x row-tile
                pl.BlockSpec((E_pad, th), lambda i, h: (0, h)),       # W1 H-chunk
                pl.BlockSpec((1, th), lambda i, h: (0, h)),           # b1 H-chunk
                pl.BlockSpec((th, E_pad), lambda i, h: (h, 0)),       # W2 H-chunk
                pl.BlockSpec((1, E_pad), lambda i, h: (0, 0)),        # b2 (invariant)
            ],
            out_specs=pl.BlockSpec((tm_eff, E_pad), lambda i, h: (i, 0)),
            scratch_shapes=[pltpu.VMEM((tm_eff, E_pad), jnp.float32)],
        ),
        compiler_params=pltpu.CompilerParams(
            dimension_semantics=("parallel", "arbitrary"),
            vmem_limit_bytes=int(vmem_limit),
        ),
        cost_estimate=cost,
    )(x2d, w1p, b1p, w2p, b2p)

    return out2d[:M, :E].reshape(B, T, E)


def feed_forward_network(x, padded_params, cfg):
    """x: (B, T, E). padded_params/cfg from prepare_params. Returns (B, T, E)."""
    w1p, b1p, w2p, b2p = padded_params
    return _ffn_forward(x, w1p, b1p, w2p, b2p, **cfg)


def init_params(key, embedding_dimension_count):
    """Deterministic init mimicking nn.Linear default (uniform +/- 1/sqrt(fan_in)).

    Weights are returned as (in_features, out_features)."""
    E = embedding_dimension_count
    H = 4 * E
    k1, k2, k3, k4 = jax.random.split(key, 4)
    bound1 = 1.0 / jnp.sqrt(E)
    bound2 = 1.0 / jnp.sqrt(H)
    w1 = jax.random.uniform(k1, (E, H), jnp.float32, -bound1, bound1)
    b1 = jax.random.uniform(k2, (H,), jnp.float32, -bound1, bound1)
    w2 = jax.random.uniform(k3, (H, E), jnp.float32, -bound2, bound2)
    b2 = jax.random.uniform(k4, (E,), jnp.float32, -bound2, bound2)
    return w1, b1, w2, b2


def _reference(x, w1, b1, w2, b2):
    h = jnp.maximum(jnp.einsum("bte,eh->bth", x, w1) + b1, 0.0)
    return jnp.einsum("bth,he->bte", h, w2) + b2


if __name__ == "__main__":
    B, T, E = 2, 8, 32          # embedding_dimension_count = 32, hidden = 128
    key = jax.random.PRNGKey(0)
    kx, kp = jax.random.split(key)

    x = jax.random.normal(kx, (B, T, E), dtype=jnp.float32)
    w1, b1, w2, b2 = init_params(kp, E)

    # Pad weights / pick tiles once (outside the per-call path).
    padded_params, cfg = prepare_params(w1, b1, w2, b2)

    out = feed_forward_network(x, padded_params, cfg)
    out = jax.block_until_ready(out)

    ref = _reference(x, w1, b1, w2, b2)
    assert out.shape == (B, T, E)
    assert jnp.allclose(out, ref, atol=1e-5, rtol=1e-5), "mismatch vs reference"

    print("KERNEL_OK")
</pallas_src>

<mosaic_0001>
module attributes {stable_mosaic.version = 11 : i64} {
  func.func @_ffn_kernel(%arg0: i32, %arg1: i32, %arg2: memref<16x128xf32, #tpu.memory_space<vmem>>, %arg3: memref<128x128xf32, #tpu.memory_space<vmem>>, %arg4: memref<1x128xf32, #tpu.memory_space<vmem>>, %arg5: memref<128x128xf32, #tpu.memory_space<vmem>>, %arg6: memref<1x128xf32, #tpu.memory_space<vmem>>, %arg7: memref<16x128xf32, #tpu.memory_space<vmem>>, %arg8: memref<16x128xf32, #tpu.memory_space<vmem>>) attributes {dimension_semantics = [#tpu.dimension_semantics<parallel>, #tpu.dimension_semantics<arbitrary>], iteration_bounds = array<i64: 1, 1>, scalar_prefetch = 0 : i64, scratch_operands = 1 : i64, tpu.core_type = #tpu.core_type<tc>, window_params = [{transform_indices = @transform_0, window_bounds = array<i64: 16, 128>}, {transform_indices = @transform_1, window_bounds = array<i64: 128, 128>}, {transform_indices = @transform_2, window_bounds = array<i64: 1, 128>}, {transform_indices = @transform_3, window_bounds = array<i64: 128, 128>}, {pipeline_mode = #tpu.pipeline_mode<synchronous>, transform_indices = @transform_4, window_bounds = array<i64: 1, 128>}, {transform_indices = @transform_5, window_bounds = array<i64: 16, 128>}]} {
    %c0_i32 = arith.constant 0 : i32
    %0 = arith.cmpi eq, %arg1, %c0_i32 : i32
    %1 = arith.extui %0 : i1 to i32
    %c0_i32_0 = arith.constant 0 : i32
    %2 = arith.cmpi ne, %1, %c0_i32_0 : i32
    scf.if %2 {
      %cst_16 = arith.constant 0.000000e+00 : f32
      %19 = vector.broadcast %cst_16 : f32 to vector<16x128xf32>
      %c0_17 = arith.constant 0 : index
      %c0_18 = arith.constant 0 : index
      %20 = vector.load %arg8[%c0_17, %c0_18] : memref<16x128xf32, #tpu.memory_space<vmem>>, vector<16x128xf32>
      tpu.vector_store %arg8[%c0_17, %c0_18], %19 {strides = array<i32>} : memref<16x128xf32, #tpu.memory_space<vmem>>, vector<16x128xf32>,
    } else {
    }
    %c0 = arith.constant 0 : index
    %c0_1 = arith.constant 0 : index
    %3 = vector.load %arg2[%c0, %c0_1] : memref<16x128xf32, #tpu.memory_space<vmem>>, vector<16x128xf32>
    %c0_2 = arith.constant 0 : index
    %c0_3 = arith.constant 0 : index
    %4 = vector.load %arg3[%c0_2, %c0_3] : memref<128x128xf32, #tpu.memory_space<vmem>>, vector<128x128xf32>
    %cst = arith.constant dense<0.000000e+00> : vector<16x128xf32>
    %5 = tpu.matmul %3, %4, %cst {dimension_numbers = #tpu.dot_dimension_numbers<[1], [0], [0], [1], [0, 0, 1, 1], [], []>} : vector<16x128xf32>, vector<128x128xf32>, vector<16x128xf32> -> vector<16x128xf32>
    %c0_4 = arith.constant 0 : index
    %c0_5 = arith.constant 0 : index
    %6 = vector.load %arg4[%c0_4, %c0_5] : memref<1x128xf32, #tpu.memory_space<vmem>>, vector<1x128xf32>
    %7 = vector.broadcast %6 : vector<1x128xf32> to vector<16x128xf32>
    %8 = arith.addf %5, %7 : vector<16x128xf32>
    %cst_6 = arith.constant 0.000000e+00 : f32
    %9 = vector.broadcast %cst_6 : f32 to vector<16x128xf32>
    %10 = arith.maximumf %8, %9 : vector<16x128xf32>
    %c0_7 = arith.constant 0 : index
    %c0_8 = arith.constant 0 : index
    %11 = vector.load %arg8[%c0_7, %c0_8] : memref<16x128xf32, #tpu.memory_space<vmem>>, vector<16x128xf32>
    %c0_9 = arith.constant 0 : index
    %c0_10 = arith.constant 0 : index
    %12 = vector.load %arg5[%c0_9, %c0_10] : memref<128x128xf32, #tpu.memory_space<vmem>>, vector<128x128xf32>
    %cst_11 = arith.constant dense<0.000000e+00> : vector<16x128xf32>
    %13 = tpu.matmul %10, %12, %cst_11 {dimension_numbers = #tpu.dot_dimension_numbers<[1], [0], [0], [1], [0, 0, 1, 1], [], []>} : vector<16x128xf32>, vector<128x128xf32>, vector<16x128xf32> -> vector<16x128xf32>
    %14 = arith.addf %11, %13 : vector<16x128xf32>
    %c0_12 = arith.constant 0 : index
    %c0_13 = arith.constant 0 : index
    %15 = vector.load %arg8[%c0_12, %c0_13] : memref<16x128xf32, #tpu.memory_space<vmem>>, vector<16x128xf32>
    tpu.vector_store %arg8[%c0_12, %c0_13], %14 {strides = array<i32>} : memref<16x128xf32, #tpu.memory_space<vmem>>, vector<16x128xf32>,
    %c0_i32_14 = arith.constant 0 : i32
    %16 = arith.cmpi eq, %arg1, %c0_i32_14 : i32
    %17 = arith.extui %16 : i1 to i32
    %c0_i32_15 = arith.constant 0 : i32
    %18 = arith.cmpi ne, %17, %c0_i32_15 : i32
    scf.if %18 {
      %c0_16 = arith.constant 0 : index
      %c0_17 = arith.constant 0 : index
      %19 = vector.load %arg8[%c0_16, %c0_17] : memref<16x128xf32, #tpu.memory_space<vmem>>, vector<16x128xf32>
      %c0_18 = arith.constant 0 : index
      %c0_19 = arith.constant 0 : index
      %20 = vector.load %arg6[%c0_18, %c0_19] : memref<1x128xf32, #tpu.memory_space<vmem>>, vector<1x128xf32>
      %21 = vector.broadcast %20 : vector<1x128xf32> to vector<16x128xf32>
      %22 = arith.addf %19, %21 : vector<16x128xf32>
      %c0_20 = arith.constant 0 : index
      %c0_21 = arith.constant 0 : index
      %23 = vector.load %arg7[%c0_20, %c0_21] : memref<16x128xf32, #tpu.memory_space<vmem>>, vector<16x128xf32>
      tpu.vector_store %arg7[%c0_20, %c0_21], %22 {strides = array<i32>} : memref<16x128xf32, #tpu.memory_space<vmem>>, vector<16x128xf32>,
    } else {
    }
    return
  }
  func.func @transform_0(%arg0: i32, %arg1: i32) -> (i32, i32) {
    %c0_i32 = arith.constant 0 : i32
    %c0_i32_0 = arith.constant 0 : i32
    return %arg0, %c0_i32 : i32, i32
  }
  func.func @transform_1(%arg0: i32, %arg1: i32) -> (i32, i32) {
    %c0_i32 = arith.constant 0 : i32
    %c0_i32_0 = arith.constant 0 : i32
    return %c0_i32, %arg1 : i32, i32
  }
  func.func @transform_2(%arg0: i32, %arg1: i32) -> (i32, i32) {
    %c0_i32 = arith.constant 0 : i32
    %c0_i32_0 = arith.constant 0 : i32
    return %c0_i32, %arg1 : i32, i32
  }
  func.func @transform_3(%arg0: i32, %arg1: i32) -> (i32, i32) {
    %c0_i32 = arith.constant 0 : i32
    %c0_i32_0 = arith.constant 0 : i32
    return %arg1, %c0_i32 : i32, i32
  }
  func.func @transform_4(%arg0: i32, %arg1: i32) -> (i32, i32) {
    %c0_i32 = arith.constant 0 : i32
    %c0_i32_0 = arith.constant 0 : i32
    %c0_i32_1 = arith.constant 0 : i32
    return %c0_i32, %c0_i32_0 : i32, i32
  }
  func.func @transform_5(%arg0: i32, %arg1: i32) -> (i32, i32) {
    %c0_i32 = arith.constant 0 : i32
    %c0_i32_0 = arith.constant 0 : i32
    return %arg0, %c0_i32 : i32, i32
  }
}

</mosaic_0001>

<bundles_post_ra>
// kernel: _ffn_forward.1
= control target key start
LH: loop header
LB: loop body
LE: loop exit
PB: predicated region body
PF: predicated region fallthrough
CT: control target
= control target key end

     0   :  { %10 = vsyncpa [#allocation4], 0  ;;  %s575_s0 = inlined_call_operand.vmem [shape: f32[16,128], index: 0, kind: input, shape index: {}]   ;;  %s576_s1 = inlined_call_operand.hbm [shape: f32[128,128], index: 1, kind: input, shape index: {}]   ;;  %s577_s2 = inlined_call_operand.vmem [shape: f32[1,128], index: 2, kind: input, shape index: {}]   ;;  %s578_s3 = inlined_call_operand.hbm [shape: f32[128,128], index: 3, kind: input, shape index: {}]   ;;  %s579_s4 = inlined_call_operand.vmem [shape: f32[1,128], index: 4, kind: input, shape index: {}]   ;;  %s580_s5 = inlined_call_operand.vmem [shape: f32[16,128], index: 5, kind: output, shape index: {}]  }
   0x1   :  { %11 = vsyncpa [#allocation6], 0  ;;  %s499_s18 = smov [#allocation3]   ;;  %s451_s22 = scalar_lea.hbm %s576_s1, 2048 }
   0x2   :  { %s19_s19 = sshll.u32 %s499_s18, 4  ;;  %p452_p0 = scmp.ne.s32.totalorder %s576_s1, %s451_s22  ;;  %s20_s19 = int_to_ptr.vmem [resolvable:$true] %s19_s19 }
   0x3   :  { %p455_p1 = scmp.lt.u32.totalorder %s451_s22, %s576_s1 }
   0x5   :  { %p457_p2 = pnand %p455_p1, %p452_p0 }
   0x7   :  { %460 = shalt.err (!%p457_p2)
}
   0x8   :  { %s461_s27 = scalar_lea.vmem %s20_s19, 2048  ;;  %p466_p4 = scmp.lt.s32.totalorder %s20_s19, %s20_s19 }
   0x9   :  { %p462_p3 = scmp.ne.s32.totalorder %s20_s19, %s461_s27  ;;  %p467_p5 = scmp.lt.s32.totalorder %s461_s27, %s461_s27 }
   0xb   :  { %p468_p6 = por %p467_p5, %p466_p4 }
   0xd   :  { %p469_p7 = pnand %p468_p6, %p462_p3 }
   0xf   :  { %472 = shalt.err (!%p469_p7)
}
  0x10   :  { %s500_s28 = smov 128   ;;  %s501_s29 = smov 8  }
  0x11   :  { %25 = dma.hbm_to_vmem [thread:$0]  %s576_s1, 2048, %s20_s19, [#allocation4], %s500_s28, %s500_s28, %s501_s29  }
  0x12   :  { %s502_s7 = smov [#allocation5]   ;;  %s473_s11 = scalar_lea.hbm %s578_s3, 2048 }
  0x13   :  { %s33_s8 = sshll.u32 %s502_s7, 4  ;;  %p474_p8 = scmp.ne.s32.totalorder %s578_s3, %s473_s11  ;;  %s34_s8 = int_to_ptr.vmem [resolvable:$true] %s33_s8 }
  0x14   :  { %p477_p9 = scmp.lt.u32.totalorder %s473_s11, %s578_s3 }
  0x16   :  { %p479_p10 = pnand %p477_p9, %p474_p8 }
  0x18   :  { %482 = shalt.err (!%p479_p10)
}
  0x19   :  { %s483_s16 = scalar_lea.vmem %s34_s8, 2048  ;;  %p488_p12 = scmp.lt.s32.totalorder %s34_s8, %s34_s8 }
  0x1a   :  { %p484_p11 = scmp.ne.s32.totalorder %s34_s8, %s483_s16  ;;  %p489_p13 = scmp.lt.s32.totalorder %s483_s16, %s483_s16 }
  0x1c   :  { %p490_p0 = por %p489_p13, %p488_p12 }
  0x1e   :  { %p491_p1 = pnand %p490_p0, %p484_p11 }
  0x20   :  { %494 = shalt.err (!%p491_p1)
}
  0x21   :  { %39 = dma.hbm_to_vmem [thread:$0]  %s578_s3, 2048, %s34_s8, [#allocation6], %s500_s28, %s500_s28, %s501_s29  }
  0x22   :  { %495 = dma.done.wait [#allocation4], 2048  }
  0x23   :  { %496 = vsyncadd [#allocation4], 4294965248 }
  0x24   :  { %497 = dma.done.wait [#allocation6], 2048  }
  0x25   :  { %498 = vsyncadd [#allocation6], 4294965248  ;;  %v56_v0 = vld [vmem:[#allocation3] sm:$0xff]  ;;  %v57_v1 = vld [vmem:[#allocation3 + $0x8] sm:$0xff] }
  0x26   :  { %v58_v2 = vld [vmem:[#allocation3 + $0x10] sm:$0xff]  ;;  %v383_v3 = vpack.c.bf16 %v57_v1, %v56_v0  ;;  %v59_v4 = vld [vmem:[#allocation3 + $0x18] sm:$0xff]  ;;  %v60_v6 = vld [vmem:[#allocation3 + $0x20] sm:$0xff] }
  0x27   :  { %v387_v5 = vpack.c.bf16 %v59_v4, %v58_v2  ;;  %v61_v7 = vld [vmem:[#allocation3 + $0x28] sm:$0xff]  ;;  %v62_v9 = vld [vmem:[#allocation3 + $0x30] sm:$0xff]  ;;  %v63_v10 = vld [vmem:[#allocation3 + $0x38] sm:$0xff] }
  0x28   :  { %384 = vmatprep.subr.bf16.mxu0 %v383_v3  ;;  %v391_v8 = vpack.c.bf16 %v61_v7, %v60_v6  ;;  %v54_v11 = vld [vmem:[%s575_s0] sm:$0xff]  ;;  %v159_v13 = vld [vmem:[#allocation5 + $0x8] sm:$0xff]  ;;  %v160_v14 = vld [vmem:[#allocation5 + $0x10] sm:$0xff]  ;;  %v395_v20 = vpack.c.bf16 %v63_v10, %v62_v9 }
  0x29   :  { %386 = vmatpush3.bf16.msra.mxu0 %v383_v3  ;;  %345 = vmatprep.mubr.f32.mxu0 %v54_v11  ;;  %v158_v12 = vld [vmem:[#allocation5] sm:$0xff]  ;;  %v161_v16 = vld [vmem:[#allocation5 + $0x18] sm:$0xff]  ;;  %v163_v19 = vld [vmem:[#allocation5 + $0x28] sm:$0xff] }
  0x2a   :  { %388 = vmatprep.subr.bf16.mxu0 %v387_v5  ;;  %v415_v15 = vpack.c.bf16 %v159_v13, %v158_v12  ;;  %v419_v17 = vpack.c.bf16 %v161_v16, %v160_v14  ;;  %v162_v18 = vld [vmem:[#allocation5 + $0x20] sm:$0xff]  ;;  %v65_v22 = vld [vmem:[#allocation3 + $0x48] sm:$0xff]  ;;  %v164_v24 = vld [vmem:[#allocation5 + $0x30] sm:$0xff] }
  0x2b   :  { %v64_v21 = vld [vmem:[#allocation3 + $0x40] sm:$0xff]  ;;  %v423_v23 = vpack.c.bf16 %v163_v19, %v162_v18  ;;  %v165_v25 = vld [vmem:[#allocation5 + $0x38] sm:$0xff]  ;;  %v66_v27 = vld [vmem:[#allocation3 + $0x50] sm:$0xff] }
  0x2c   :  { %416 = vmatprep.subr.bf16.mxu1 %v415_v15  ;;  %v399_v26 = vpack.c.bf16 %v65_v22, %v64_v21  ;;  %v67_v28 = vld [vmem:[#allocation3 + $0x58] sm:$0xff]  ;;  %v427_v29 = vpack.c.bf16 %v165_v25, %v164_v24  ;;  %v166_v30 = vld [vmem:[#allocation5 + $0x40] sm:$0xff]  ;;  %v167_v31 = vld [vmem:[#allocation5 + $0x48] sm:$0xff] }
  0x2d   :  { %390 = vmatpush3.bf16.msra.mxu0 %v387_v5  ;;  %418 = vmatpush3.bf16.msra.mxu1 %v415_v15  ;;  %v403_v32 = vpack.c.bf16 %v67_v28, %v66_v27  ;;  %v68_v33 = vld [vmem:[#allocation3 + $0x60] sm:$0xff]  ;;  %v69_v34 = vld [vmem:[#allocation3 + $0x68] sm:$0xff]  ;;  %v431_v35 = vpack.c.bf16 %v167_v31, %v166_v30  ;;  %v168_v36 = vld [vmem:[#allocation5 + $0x50] sm:$0xff] }
  0x2e   :  { %392 = vmatprep.subr.bf16.mxu0 %v391_v8  ;;  %420 = vmatprep.subr.bf16.mxu1 %v419_v17  ;;  %v169_v37 = vld [vmem:[#allocation5 + $0x58] sm:$0xff]  ;;  %v407_v38 = vpack.c.bf16 %v69_v34, %v68_v33  ;;  %v70_v39 = vld [vmem:[#allocation3 + $0x70] sm:$0xff]  ;;  %v170_v42 = vld [vmem:[#allocation5 + $0x60] sm:$0xff] }
  0x2f   :  { %v71_v40 = vld [vmem:[#allocation3 + $0x78] sm:$0xff]  ;;  %v435_v41 = vpack.c.bf16 %v169_v37, %v168_v36  ;;  %v171_v43 = vld [vmem:[#allocation5 + $0x68] sm:$0xff]  ;;  %v172_v47 = vld [vmem:[#allocation5 + $0x70] sm:$0xff] }
  0x30   :  { %v411_v44 = vpack.c.bf16 %v71_v40, %v70_v39  ;;  %v439_v45 = vpack.c.bf16 %v171_v43, %v170_v42  ;;  %v55_v46 = vld [vmem:[%s575_s0 + $0x8] sm:$0xff]  ;;  %v173_v48 = vld [vmem:[#allocation5 + $0x78] sm:$0xff]  ;;  %v275_v50 = vld [vmem:[%s577_s2] ss:$0 sm:$0xff] }
  0x31   :  { %394 = vmatpush3.bf16.msra.mxu0 %v391_v8  ;;  %422 = vmatpush3.bf16.msra.mxu1 %v419_v17  ;;  %v443_v49 = vpack.c.bf16 %v173_v48, %v172_v47  ;;  %v276_v57 = vld [vmem:[%s579_s4] ss:$0 sm:$0xff] }
  0x32   :  { %396 = vmatprep.subr.bf16.mxu0 %v395_v20  ;;  %424 = vmatprep.subr.bf16.mxu1 %v423_v23 }
  0x35   :  { %398 = vmatpush3.bf16.msra.mxu0 %v395_v20  ;;  %426 = vmatpush3.bf16.msra.mxu1 %v423_v23 }
  0x36   :  { %400 = vmatprep.subr.bf16.mxu0 %v399_v26  ;;  %428 = vmatprep.subr.bf16.mxu1 %v427_v29 }
  0x39   :  { %402 = vmatpush3.bf16.msra.mxu0 %v399_v26  ;;  %430 = vmatpush3.bf16.msra.mxu1 %v427_v29 }
  0x3a   :  { %404 = vmatprep.subr.bf16.mxu0 %v403_v32  ;;  %432 = vmatprep.subr.bf16.mxu1 %v431_v35 }
  0x3d   :  { %406 = vmatpush3.bf16.msra.mxu0 %v403_v32  ;;  %434 = vmatpush3.bf16.msra.mxu1 %v431_v35 }
  0x3e   :  { %408 = vmatprep.subr.bf16.mxu0 %v407_v38  ;;  %436 = vmatprep.subr.bf16.mxu1 %v435_v41 }
  0x41   :  { %410 = vmatpush3.bf16.msra.mxu0 %v407_v38  ;;  %438 = vmatpush3.bf16.msra.mxu1 %v435_v41 }
  0x42   :  { %412 = vmatprep.subr.bf16.mxu0 %v411_v44  ;;  %440 = vmatprep.subr.bf16.mxu1 %v439_v45 }
  0x45   :  { %414 = vmatpush3.bf16.msra.mxu0 %v411_v44  ;;  %442 = vmatpush3.bf16.msra.mxu1 %v439_v45 }
  0x46   :  { %444 = vmatprep.subr.bf16.mxu1 %v443_v49 }
  0x48   :  { %346 = vmatmul.mubr.f32.vlgmr.msra.gmra.mrb[0].mxu0 %v55_v46 }
  0x49   :  { %446 = vmatpush3.bf16.msra.mxu1 %v443_v49 }
 0x11b   :  { %v347_v51 = vpop.f32.mrb[0].mxu0 }
 0x11c   :  { %v151_v52 = vadd.f32 %v347_v51, %v275_v50  ;;  %v145_v53 = vpop.f32.mrb[1].mxu0 }
 0x11d   :  { %v146_v54 = vadd.f32 %v275_v50, %v145_v53 }
 0x11e   :  { %v155_v56 = vmax.f32 %v151_v52, 0.0 }
 0x11f   :  { %v154_v55 = vmax.f32 %v146_v54, 0.0 }
 0x121   :  { %380 = vmatprep.mubr.f32.mxu1 %v154_v55 }
 0x122   :  { %381 = vmatmul.mubr.f32.vlgmr.msra.gmra.mrb[0].mxu1 %v155_v56 }
 0x1f5   :  { %v382_v58 = vpop.f32.mrb[0].mxu1 }
 0x1f6   :  { %v266_v59 = vadd.f32 %v382_v58, %v276_v57  ;;  %v240_v60 = vpop.f32.mrb[1].mxu1 }
 0x1f7   :  { %v265_v61 = vadd.f32 %v276_v57, %v240_v60 }
 0x1f8   :  { %268 = vst [vmem:[%s580_s5 + $0x8] sm:$0xff] %v266_v59 }
 0x1f9   :  { %267 = vst [vmem:[%s580_s5] sm:$0xff] %v265_v61 }
 0x1fa   :  { %273 = vsyncpa [#allocation4], 1 }
 0x1fb   :  { %274 = vsyncpa [#allocation6], 1 }

</bundles_post_ra>
